<compile_context>
chip_gen: v6e
topology: v6e:2x2x1
jax: 0.10.0
libtpu: 0.0.40
codegen_flags: <defaults>
</compile_context>

<pallas_src>
import functools

import jax
import jax.numpy as jnp
from jax import lax
from jax.experimental import pallas as pl
from jax.experimental.pallas import tpu as pltpu


# ----------------------------------------------------------------------------
# Pallas kernel
# ----------------------------------------------------------------------------
def _bspline_kernel(cpw_ref, bias_ref, o_ref, *, grid_size, img_w,
                    scale_y, scale_x, chunk):
    # cpw_ref  : (O, G*G)   out_weight folded into control points
    # bias_ref : (O, 1)     output_map.bias
    # o_ref    : (O, TM)    lane-dense output tile (pixels on lanes)
    G = grid_size
    GG = G * G
    tm = o_ref.shape[1]
    num_chunks = tm // chunk

    # --- tiny per-grid-step constants (single lane wide) ---------------------
    # Flat node index g -> (i, j) = (g // G, g % G).  floor((g+0.5)/G) == g//G
    # exactly for the integer-valued iota (the +0.5 keeps floor away from the
    # rounding boundary).  This runs on a (GG, 1) column, not per pixel.
    idx = lax.broadcasted_iota(jnp.int32, (GG, 1), 0).astype(jnp.float32)
    node_y = jnp.floor((idx + 0.5) / G)              # (GG, 1)  == g // G
    node_x = idx - node_y * G                        # (GG, 1)  == g %  G

    cpw = cpw_ref[...]                               # (O, GG)
    bias = bias_ref[...]                             # (O, 1)

    w_f = float(img_w)
    tile_start = pl.program_id(0) * tm               # int32 scalar
    # Lane offsets within a chunk (loop-invariant; built once per grid step).
    lane = lax.broadcasted_iota(jnp.int32, (1, chunk), 1).astype(jnp.float32)

    def body(c, _):
        off = pl.multiple_of(c * chunk, chunk)
        # Flattened pixel index for every lane of this chunk.  Exact in f32
        # for p < 2**24 (checked in the wrapper); padded lanes of a partial
        # final block produce garbage that Pallas masks on the HBM store.
        p = lane + (tile_start + off).astype(jnp.float32)
        row = jnp.floor(p / w_f)                     # p // W
        col = p - row * w_f                          # p %  W
        gy = row * scale_y                           # in [0, G-1]
        gx = col * scale_x

        # Tensor-product hat (linear B-spline) weights == bilinear blend
        # weights, including the edge clamp of the reference.
        wy = jnp.maximum(0.0, 1.0 - jnp.abs(gy - node_y))   # (GG, chunk)
        wx = jnp.maximum(0.0, 1.0 - jnp.abs(gx - node_x))   # (GG, chunk)
        w = wy * wx                                          # (GG, chunk)

        out = jnp.dot(cpw, w, preferred_element_type=jnp.float32) + bias
        o_ref[:, pl.ds(off, chunk)] = out.astype(o_ref.dtype)
        return _

    lax.fori_loop(0, num_chunks, body, None)


# ----------------------------------------------------------------------------
# Tile selection + pallas_call wrapper
# ----------------------------------------------------------------------------
def _choose_tile(hw, out_channels):
    # Largest power-of-two multiple of 128 lanes such that
    #   * the double-buffered output block stays small (~2 MiB per buffer) so
    #     the choice is portable to v7x's smaller VMEM,
    #   * the grid has >= 2 steps whenever hw > 128 (pipeline overlap, 2 TCs).
    max_block_bytes = 2 * 1024 * 1024
    cap = max(128, min(65536, (max_block_bytes // (out_channels * 4)) // 128 * 128))
    t = 128
    while t * 2 <= cap:
        t *= 2
    cap = t
    tm = 128
    while tm * 2 <= cap and tm * 2 < hw:
        tm *= 2
    return tm


def _bspline_pallas(cpw_t, bias_col, grid_size, H, W):
    # cpw_t    : (O, G*G) f32, bias_col : (O, 1) f32
    O, GG = cpw_t.shape
    HW = H * W
    # TODO(synk): switch the p // W, p % W math to int32 if images with
    # H*W >= 2**24 (~16.7M pixels) ever need to be supported.
    assert HW < (1 << 24), "in-kernel f32 index math requires H*W < 2**24"

    tm = _choose_tile(HW, O)
    chunk = min(1024, tm)                 # compute sub-chunk (bounds live ranges)
    num_steps = pl.cdiv(HW, tm)           # last block may be partial (masked store)

    scale_y = (grid_size - 1) / (H - 1) if H > 1 else 0.0
    scale_x = (grid_size - 1) / (W - 1) if W > 1 else 0.0

    kernel = functools.partial(_bspline_kernel, grid_size=grid_size, img_w=W,
                               scale_y=scale_y, scale_x=scale_x, chunk=chunk)

    return pl.pallas_call(
        kernel,
        out_shape=jax.ShapeDtypeStruct((O, HW), jnp.float32),
        grid_spec=pltpu.PrefetchScalarGridSpec(
            num_scalar_prefetch=0,
            grid=(num_steps,),
            in_specs=[
                pl.BlockSpec((O, GG), lambda i: (0, 0)),   # folded table (tiny, replicated)
                pl.BlockSpec((O, 1), lambda i: (0, 0)),    # bias (tiny, replicated)
            ],
            out_specs=pl.BlockSpec((O, tm), lambda i: (0, i)),
        ),
        compiler_params=pltpu.CompilerParams(
            dimension_semantics=("parallel",)),
    )(cpw_t, bias_col)


# ----------------------------------------------------------------------------
# Batch-invariant jitted core (returns (O, H, W)); wrapper broadcasts batch.
# ----------------------------------------------------------------------------
@functools.partial(jax.jit, static_argnames=("grid_size", "H", "W"))
def _spatial_bspline_core(control_points, out_weight, out_bias, *,
                          grid_size, H, W):
    O = out_weight.shape[0]
    # Fold the linear output map into the (tiny) control-point table.
    cpw_t = (out_weight @ control_points.T).astype(jnp.float32)   # (O, G*G)
    bias_col = out_bias.reshape(O, 1).astype(jnp.float32)
    out = _bspline_pallas(cpw_t, bias_col, grid_size, H, W)       # (O, H*W)
    return out.reshape(O, H, W)                                   # free reshape


def spatial_bspline_forward(x, control_points, out_weight, out_bias, grid_size):
    """x: (B, C, H, W) float32.  Returns (B, out_channels, H, W) float32."""
    B, C, H, W = x.shape
    assert C == control_points.shape[1]
    out_ohw = _spatial_bspline_core(control_points, out_weight, out_bias,
                                    grid_size=grid_size, H=H, W=W)
    # Result is batch-invariant (matches the module's .repeat(B,1,1,1)); the
    # broadcast stays outside the jitted/kernel path.
    return jnp.broadcast_to(out_ohw[None], (B,) + out_ohw.shape)


# ----------------------------------------------------------------------------
# Pure-JAX reference (mirrors the PyTorch forward) for a correctness check
# ----------------------------------------------------------------------------
def spatial_bspline_ref(x, control_points, out_weight, out_bias, grid_size):
    B, C, H, W = x.shape
    G = grid_size
    y_coords = jnp.linspace(0.0, 1.0, H, dtype=jnp.float32)
    x_coords = jnp.linspace(0.0, 1.0, W, dtype=jnp.float32)
    grid_y, grid_x = jnp.meshgrid(y_coords, x_coords, indexing="ij")
    grid_y = grid_y * (G - 1)
    grid_x = grid_x * (G - 1)
    i0 = jnp.floor(grid_y).astype(jnp.int32)
    j0 = jnp.floor(grid_x).astype(jnp.int32)
    i1 = jnp.minimum(i0 + 1, G - 1)
    j1 = jnp.minimum(j0 + 1, G - 1)
    y_frac = (grid_y - i0)[..., None]
    x_frac = (grid_x - j0)[..., None]
    cp = lambda ii, jj: control_points[(ii * G + jj).reshape(-1)].reshape(H, W, C)
    top = cp(i0, j0) * (1 - x_frac) + cp(i0, j1) * x_frac
    bottom = cp(i1, j0) * (1 - x_frac) + cp(i1, j1) * x_frac
    out = top * (1 - y_frac) + bottom * y_frac
    out = out.reshape(H * W, C) @ out_weight.T + out_bias
    out = out.reshape(H, W, -1).transpose(2, 0, 1)
    return jnp.broadcast_to(out[None], (B,) + out.shape)


if __name__ == "__main__":
    B, C_in, C_out, H, W, G = 2, 4, 8, 16, 16, 5

    key = jax.random.PRNGKey(0)
    k_x, k_cp, k_w, k_b = jax.random.split(key, 4)

    # Deterministic synthetic parameters (shapes match the nn.Module __init__).
    x = jax.random.normal(k_x, (B, C_in, H, W), dtype=jnp.float32)
    control_points = jax.random.normal(k_cp, (G * G, C_in), jnp.float32) * 0.1
    out_weight = jax.random.normal(k_w, (C_out, C_in), jnp.float32) * 0.1
    out_bias = jax.random.normal(k_b, (C_out,), jnp.float32) * 0.1

    out = jax.block_until_ready(
        spatial_bspline_forward(x, control_points, out_weight, out_bias, G))
    ref = spatial_bspline_ref(x, control_points, out_weight, out_bias, G)
    assert out.shape == (B, C_out, H, W)
    # Tolerance covers MXU f32 multi-pass / fold-vs-unfolded association
    # differences; any structural bug would be O(0.1) off.
    assert jnp.allclose(out, ref, atol=1e-3, rtol=1e-2), \
        f"max abs err = {jnp.max(jnp.abs(out - ref))}"

    # Exercise the ragged path: H*W = 120 (< 128, partial final block,
    # masked store, no post-kernel slice copy).
    x2 = jax.random.normal(k_x, (1, C_in, 10, 12), dtype=jnp.float32)
    out2 = jax.block_until_ready(
        spatial_bspline_forward(x2, control_points, out_weight, out_bias, G))
    ref2 = spatial_bspline_ref(x2, control_points, out_weight, out_bias, G)
    assert out2.shape == (1, C_out, 10, 12)
    assert jnp.allclose(out2, ref2, atol=1e-3, rtol=1e-2), \
        f"max abs err = {jnp.max(jnp.abs(out2 - ref2))}"

    print("KERNEL_OK")
</pallas_src>

<mosaic_0001>
module attributes {stable_mosaic.version = 11 : i64} {
  func.func @_bspline_kernel(%arg0: i32, %arg1: memref<8x25xf32, #tpu.memory_space<vmem>>, %arg2: memref<8x1xf32, #tpu.memory_space<vmem>>, %arg3: memref<8x128xf32, #tpu.memory_space<vmem>>) attributes {dimension_semantics = [#tpu.dimension_semantics<parallel>], iteration_bounds = array<i64: 2>, scalar_prefetch = 0 : i64, scratch_operands = 0 : i64, tpu.core_type = #tpu.core_type<tc>, window_params = [{pipeline_mode = #tpu.pipeline_mode<synchronous>, transform_indices = @transform_0, window_bounds = array<i64: 8, 25>}, {pipeline_mode = #tpu.pipeline_mode<synchronous>, transform_indices = @transform_1, window_bounds = array<i64: 8, 1>}, {transform_indices = @transform_2, window_bounds = array<i64: 8, 128>}]} {
    %0 = tpu.iota {dimensions = array<i32: 0>} : vector<25x1xi32>
    %1 = arith.sitofp %0 : vector<25x1xi32> to vector<25x1xf32>
    %cst = arith.constant 5.000000e-01 : f32
    %2 = vector.broadcast %cst : f32 to vector<25x1xf32>
    %3 = arith.addf %1, %2 : vector<25x1xf32>
    %cst_0 = arith.constant 5.000000e+00 : f32
    %4 = vector.broadcast %cst_0 : f32 to vector<25x1xf32>
    %5 = arith.divf %3, %4 : vector<25x1xf32>
    %6 = math.floor %5 : vector<25x1xf32>
    %cst_1 = arith.constant 5.000000e+00 : f32
    %7 = vector.broadcast %cst_1 : f32 to vector<25x1xf32>
    %8 = arith.mulf %6, %7 : vector<25x1xf32>
    %9 = arith.subf %1, %8 : vector<25x1xf32>
    %c0 = arith.constant 0 : index
    %c0_2 = arith.constant 0 : index
    %10 = vector.load %arg1[%c0, %c0_2] : memref<8x25xf32, #tpu.memory_space<vmem>>, vector<8x25xf32>
    %c0_3 = arith.constant 0 : index
    %c0_4 = arith.constant 0 : index
    %11 = vector.load %arg2[%c0_3, %c0_4] : memref<8x1xf32, #tpu.memory_space<vmem>>, vector<8x1xf32>
    %c128_i32 = arith.constant 128 : i32
    %12 = arith.muli %arg0, %c128_i32 : i32
    %13 = tpu.iota {dimensions = array<i32: 1>} : vector<1x128xi32>
    %14 = arith.sitofp %13 : vector<1x128xi32> to vector<1x128xf32>
    %c0_i32 = arith.constant 0 : i32
    %c128_i32_5 = arith.constant 128 : i32
    %15 = arith.muli %c0_i32, %c128_i32_5 : i32
    %16 = tpu.assume_multiple %15, 128 : i32
    %17 = arith.addi %12, %16 : i32
    %18 = arith.sitofp %17 : i32 to f32
    %19 = vector.broadcast %18 : f32 to vector<1x128xf32>
    %20 = arith.addf %14, %19 : vector<1x128xf32>
    %cst_6 = arith.constant 1.600000e+01 : f32
    %21 = vector.broadcast %cst_6 : f32 to vector<1x128xf32>
    %22 = arith.divf %20, %21 : vector<1x128xf32>
    %23 = math.floor %22 : vector<1x128xf32>
    %cst_7 = arith.constant 1.600000e+01 : f32
    %24 = vector.broadcast %cst_7 : f32 to vector<1x128xf32>
    %25 = arith.mulf %23, %24 : vector<1x128xf32>
    %26 = arith.subf %20, %25 : vector<1x128xf32>
    %cst_8 = arith.constant 0.266666681 : f32
    %27 = vector.broadcast %cst_8 : f32 to vector<1x128xf32>
    %28 = arith.mulf %23, %27 : vector<1x128xf32>
    %cst_9 = arith.constant 0.266666681 : f32
    %29 = vector.broadcast %cst_9 : f32 to vector<1x128xf32>
    %30 = arith.mulf %26, %29 : vector<1x128xf32>
    %31 = vector.broadcast %28 : vector<1x128xf32> to vector<25x128xf32>
    %32 = vector.broadcast %6 : vector<25x1xf32> to vector<25x128xf32>
    %33 = arith.subf %31, %32 : vector<25x128xf32>
    %34 = math.absf %33 : vector<25x128xf32>
    %cst_10 = arith.constant 1.000000e+00 : f32
    %35 = vector.broadcast %cst_10 : f32 to vector<25x128xf32>
    %36 = arith.subf %35, %34 : vector<25x128xf32>
    %cst_11 = arith.constant 0.000000e+00 : f32
    %37 = vector.broadcast %cst_11 : f32 to vector<25x128xf32>
    %38 = arith.maximumf %37, %36 : vector<25x128xf32>
    %39 = vector.broadcast %30 : vector<1x128xf32> to vector<25x128xf32>
    %40 = vector.broadcast %9 : vector<25x1xf32> to vector<25x128xf32>
    %41 = arith.subf %39, %40 : vector<25x128xf32>
    %42 = math.absf %41 : vector<25x128xf32>
    %cst_12 = arith.constant 1.000000e+00 : f32
    %43 = vector.broadcast %cst_12 : f32 to vector<25x128xf32>
    %44 = arith.subf %43, %42 : vector<25x128xf32>
    %cst_13 = arith.constant 0.000000e+00 : f32
    %45 = vector.broadcast %cst_13 : f32 to vector<25x128xf32>
    %46 = arith.maximumf %45, %44 : vector<25x128xf32>
    %47 = arith.mulf %38, %46 : vector<25x128xf32>
    %cst_14 = arith.constant dense<0.000000e+00> : vector<8x128xf32>
    %48 = tpu.matmul %10, %47, %cst_14 {dimension_numbers = #tpu.dot_dimension_numbers<[1], [0], [0], [1], [0, 0, 1, 1], [], []>} : vector<8x25xf32>, vector<25x128xf32>, vector<8x128xf32> -> vector<8x128xf32>
    %49 = vector.broadcast %11 : vector<8x1xf32> to vector<8x128xf32>
    %50 = arith.addf %48, %49 : vector<8x128xf32>
    %c0_15 = arith.constant 0 : index
    %51 = arith.index_cast %16 : i32 to index
    %52 = vector.load %arg3[%c0_15, %51] : memref<8x128xf32, #tpu.memory_space<vmem>>, vector<8x128xf32>
    tpu.vector_store %arg3[%c0_15, %51], %50 {strides = array<i32>} : memref<8x128xf32, #tpu.memory_space<vmem>>, vector<8x128xf32>,
    %c1_i32 = arith.constant 1 : i32
    return
  }
  func.func @transform_0(%arg0: i32) -> (i32, i32) {
    %c0_i32 = arith.constant 0 : i32
    %c0_i32_0 = arith.constant 0 : i32
    %c0_i32_1 = arith.constant 0 : i32
    return %c0_i32, %c0_i32_0 : i32, i32
  }
  func.func @transform_1(%arg0: i32) -> (i32, i32) {
    %c0_i32 = arith.constant 0 : i32
    %c0_i32_0 = arith.constant 0 : i32
    %c0_i32_1 = arith.constant 0 : i32
    return %c0_i32, %c0_i32_0 : i32, i32
  }
  func.func @transform_2(%arg0: i32) -> (i32, i32) {
    %c0_i32 = arith.constant 0 : i32
    %c0_i32_0 = arith.constant 0 : i32
    return %c0_i32, %arg0 : i32, i32
  }
}

</mosaic_0001>

<bundles_post_ra>
// kernel: _spatial_bspline_core.1
= control target key start
LH: loop header
LB: loop body
LE: loop exit
PB: predicated region body
PF: predicated region fallthrough
CT: control target
= control target key end

     0   :  { %s394_s9 = smov 0   ;;  %s424_s0 = inlined_call_operand.vmem [shape: f32[8,25], index: 0, kind: input, shape index: {}]   ;;  %s425_s1 = inlined_call_operand.vmem [shape: f32[8,1], index: 1, kind: input, shape index: {}]   ;;  %s426_s2 = inlined_call_operand.vmem [shape: f32[8,256], index: 2, kind: output, shape index: {}]  }
   0x1 LB: > { %s400_s10 = sadd.s32 4294967295, %s374_s9   ;;  %p333_p0 = scmp.ge.s32.totalorder %s374_s9, 1  ;;  %s374_s9 = sphi %s394_s9, %s12_s9  }
   0x2   : > { %p102_p1 = scmp.lt.s32.totalorder %s374_s9, 3 }
   0x4   : > { %p103_p2 = pnand %p333_p0, %p102_p1 }
   0x5   : > { %s335_s11 = sshll.u32 (!%p103_p2), %s400_s10, 7  ;;  %p118_p3 = scmp.lt.s32.totalorder (!%p103_p2), %s400_s10, 1 }
   0x6   : > { %106 = sbr.rel (%p103_p2) target bundleno = 242 (0xf2), region = 28  ;;  %s159_s14 = scvt.s32.f32 (!%p103_p2), %s335_s11 }
   0xb   : > { %v122_v0 = vlaneseq  ;;  %v153_v1 = vld [vmem:[%s425_s1] sm:$0xff]  ;;  %v376_v2 = vmov 0.0   ;;  %vm377_vm0 = vmmov 0   ;;  %v378_v5 = vmov 0   ;;  %s428_s10 = smov (!%p118_p3, %s400_s10), 1 }
   0xc   : > { %345 = vmatprep.subr.mxu0 %v376_v2  ;;  %353 = vmatprep.mubr.msk.f32.mxu0 %vm377_vm0, %v376_v2  ;;  %v160_v6 = vstv %s159_s14  ;;  %vm214_vm1 = vcmask 1040384   ;;  %vm210_vm2 = vcmask 203776   ;;  %s334_s17 = sshll.u32 %s428_s10, 3 }
   0xd   : > { %v123_v3 = vshrl.u32 %v122_v0, 7  ;;  %v156_v4 = vand.u32 127, %v122_v0  ;;  %367 = vset.pattern.permute.xlu0 %v378_v5  ;;  %s121_s20 = scalar_lea.vmem %s426_s2, %s334_s17 }
   0xe   : > { %207 = vperm.xlu0 %367, %v153_v1  }
   0xf   : > { %v126_v7 = vadd.s32 24, %v123_v3  ;;  %v157_v8 = vcvt.s32.f32 %v156_v4  ;;  %v125_v9 = vadd.s32 16, %v123_v3  ;;  %v124_v10 = vadd.s32 8, %v123_v3 }
  0x10   : > { %v127_v11 = vcvt.s32.f32 %v123_v3 }
  0x11   : > { %v130_v12 = vcvt.s32.f32 %v126_v7  ;;  %v161_v13 = vadd.f32 %v160_v6, %v157_v8  ;;  %v129_v14 = vcvt.s32.f32 %v125_v9  ;;  %v128_v15 = vcvt.s32.f32 %v124_v10 }
  0x12   : > { %v131_v16 = vadd.f32 0.5, %v127_v11 }
  0x13   : > { %v134_v17 = vadd.f32 0.5, %v130_v12  ;;  %v163_v18 = vmul.f32 0.0625, %v161_v13  ;;  %v133_v19 = vadd.f32 0.5, %v129_v14  ;;  %v132_v20 = vadd.f32 0.5, %v128_v15 }
  0x14   : > { %v136_v21 = vmul.f32 0.2, %v131_v16 }
  0x15   : > { %v139_v22 = vmul.f32 0.2, %v134_v17  ;;  %v164_v23 = vfloor.f32 %v163_v18  ;;  %v138_v24 = vmul.f32 0.2, %v133_v19  ;;  %v137_v25 = vmul.f32 0.2, %v132_v20 }
  0x16   : > { %v140_v26 = vfloor.f32 %v136_v21 }
  0x17   : > { %v143_v27 = vfloor.f32 %v139_v22  ;;  %v165_v28 = vmul.f32 16.0, %v164_v23  ;;  %v167_v29 = vmul.f32 0.26666668, %v164_v23  ;;  %v142_v30 = vfloor.f32 %v138_v24 }
  0x18   : > { %v141_v31 = vfloor.f32 %v137_v25  ;;  %v144_v32 = vmul.f32 5.0, %v140_v26 }
  0x19   : > { %v147_v33 = vmul.f32 5.0, %v143_v27  ;;  %v166_v34 = vsub.f32 %v161_v13, %v165_v28  ;;  %v172_v35 = vsub.f32 %v167_v29, %v143_v27  ;;  %v146_v36 = vmul.f32 5.0, %v142_v30 }
  0x1a   : > { %v171_v37 = vsub.f32 %v167_v29, %v142_v30  ;;  %v145_v38 = vmul.f32 5.0, %v141_v31  ;;  %v170_v39 = vsub.f32 %v167_v29, %v141_v31  ;;  %v148_v40 = vsub.f32 %v127_v11, %v144_v32 }
  0x1b   : > { %v151_v41 = vsub.f32 %v130_v12, %v147_v33  ;;  %v168_v42 = vmul.f32 0.26666668, %v166_v34  ;;  %v176_v43 = vand.u32 2147483647, %v172_v35  ;;  %v150_v44 = vsub.f32 %v129_v14, %v146_v36 }
  0x1c   : > { %v175_v45 = vand.u32 2147483647, %v171_v37  ;;  %v149_v46 = vsub.f32 %v128_v15, %v145_v38  ;;  %v174_v47 = vand.u32 2147483647, %v170_v39  ;;  %v169_v48 = vsub.f32 %v167_v29, %v140_v26  ;;  %v152_v15 = vld [vmem:[%s424_s0] sm:$0xff] }
  0x1d   : > { %v180_v49 = vsub.f32 1.0, %v176_v43  ;;  %v188_v50 = vsub.f32 %v168_v42, %v151_v41  ;;  %v187_v51 = vsub.f32 %v168_v42, %v150_v44  ;;  %v185_v52 = vsub.f32 %v168_v42, %v148_v40 }
  0x1e   : > { %v179_v53 = vsub.f32 1.0, %v175_v45  ;;  %v186_v54 = vsub.f32 %v168_v42, %v149_v46  ;;  %v173_v55 = vand.u32 2147483647, %v169_v48  ;;  %v178_v58 = vsub.f32 1.0, %v174_v47 }
  0x1f   : > { %v192_v56 = vand.u32 2147483647, %v188_v50  ;;  %v191_v57 = vand.u32 2147483647, %v187_v51  ;;  %v184_v59 = vmax.f32 %v180_v49, 0.0 }
  0x20   : > { %v183_v60 = vmax.f32 %v179_v53, 0.0  ;;  %v190_v61 = vand.u32 2147483647, %v186_v54  ;;  %v177_v0 = vsub.f32 1.0, %v173_v55  ;;  %v189_v1 = vand.u32 2147483647, %v185_v52 }
  0x21   : > { %v196_v62 = vsub.f32 1.0, %v192_v56  ;;  %v195_v63 = vsub.f32 1.0, %v191_v57  ;;  %v182_v6 = vmax.f32 %v178_v58, 0.0 }
  0x22   : > { %v194_v3 = vsub.f32 1.0, %v190_v61  ;;  %v193_v7 = vsub.f32 1.0, %v189_v1  ;;  %v181_v11 = vmax.f32 %v177_v0, 0.0 }
  0x23   : > { %v200_v4 = vmax.f32 %v196_v62, 0.0  ;;  %v199_v5 = vmax.f32 %v195_v63, 0.0 }
  0x24   : > { %v198_v8 = vmax.f32 %v194_v3, 0.0  ;;  %v197_v12 = vmax.f32 %v193_v7, 0.0 }
  0x25   : > { %v204_v9 = vmul.f32 %v200_v4, %v184_v59  ;;  %v203_v10 = vmul.f32 %v199_v5, %v183_v60 }
  0x26   : > { %v202_v13 = vmul.f32 %v198_v8, %v182_v6  ;;  %v201_v14 = vmul.f32 %v197_v12, %v181_v11 }
  0x27   : > { %346 = vmatpush3.msk.msra.mxu0 %vm214_vm1, %v204_v9 }
  0x28   : > { %347 = vmatprep.subr.mxu0 %v376_v2 }
  0x29   : > { %348 = vmatpush3.msra.mxu0 %v203_v10 }
  0x2a   : > { %349 = vmatprep.subr.mxu0 %v376_v2 }
  0x2b   : > { %350 = vmatpush3.msra.mxu0 %v202_v13 }
  0x2c   : > { %351 = vmatprep.subr.mxu0 %v376_v2 }
  0x2d   : > { %352 = vmatpush3.msra.mxu0 %v201_v14 }
  0x2e   : > { %354 = vmatmul.mubr.msk.f32.vlgmr.msra.gmra.mxu0 %vm210_vm2, %v152_v15 }
  0x89   : > { %v208_v16 = vpop.permute.xlu0 %207 }
  0xee   : > { %v284_v17 = vpop.f32.mrf.mxu0 }
  0xef   : > { %v285_v18 = vadd.f32 %v284_v17, %v208_v16 }
  0xf0   : > { %v355_v19 = vpop.f32.mrf.mxu0 }
  0xf1   : > { %288 = vst [vmem:[%s121_s20] sm:$0xff] %v285_v18 }
  0xf2 PF: > { %s12_s9 = sadd.s32 1, %s374_s9  }
  0xf3   : > { %p9_p4 = scmp.ge.s32.totalorder %s12_s9, 4  }
  0xf5   :  { %11 = sbr.rel (!%p9_p4) target bundleno = 1 (0x1), region = 55 }

</bundles_post_ra>
